<compile_context>
chip_gen: v6e
topology: v6e:2x2x1
jax: 0.10.0
libtpu: 0.0.40
codegen_flags: <defaults>
</compile_context>

<pallas_src>
import functools

import jax
import jax.numpy as jnp
from jax.experimental import pallas as pl
from jax.experimental.pallas import tpu as pltpu


def _int_pow(x, n):
    """x**n for a static non-negative integer n via repeated squaring (VPU only).

    Matches pow semantics for the cases we need (pow(0, 0) == 1).
    """
    if n == 0:
        return jnp.ones_like(x)
    result = None
    base = x
    while n > 0:
        if n & 1:
            result = base if result is None else result * base
        n >>= 1
        if n:
            base = base * base
    return result


def _pow_neg(x, gamma_neg):
    """x**gamma_neg, using repeated squaring when gamma_neg is a small int."""
    if float(gamma_neg).is_integer() and 0.0 <= gamma_neg <= 16.0:
        return _int_pow(x, int(gamma_neg))
    return jnp.power(x, jnp.float32(gamma_neg))


def _asl_kernel(x_ref, t_ref, out_ref, *, gamma_pos, gamma_neg, eps,
                num_classes, batch_size, reduce_rows):
    # x_ref:  (TB, C) logits in VMEM (tail tile may over-hang the batch: garbage rows)
    # t_ref:  (TB, 1) int32 targets in VMEM
    # out_ref: (8,128) per-tile partial-sum slab (reduce_rows) OR (TB,1) per-row loss
    pid = pl.program_id(0)

    x = x_ref[...].astype(jnp.float32)                       # (TB, C)
    tgt = t_ref[...]                                         # (TB, 1) int32
    TB, C = x.shape

    # ---- log-softmax pieces; single full-tile exp, reused for probabilities ----
    m = jnp.max(x, axis=-1, keepdims=True)                   # (TB, 1)
    shifted = x - m                                          # (TB, C)
    exp_shifted = jnp.exp(shifted)                           # (TB, C)  only full-tile EUP op
    sum_exp = jnp.sum(exp_shifted, axis=-1, keepdims=True)   # (TB, 1)
    lse = jnp.log(sum_exp)                                   # (TB, 1)

    one_hot = jax.lax.broadcasted_iota(jnp.int32, (TB, C), 1) == tgt   # (TB, C) bool

    # valid-row mask (handles the over-hanging trailing tile; no input padding)
    row_ids = jax.lax.broadcasted_iota(jnp.int32, (TB, 1), 0)
    valid = (pid * TB + row_ids) < batch_size                # (TB, 1) bool

    # target-class gather via select + reduce (no one-hot float cast / multiply)
    shifted_t = jnp.sum(jnp.where(one_hot, shifted, 0.0), axis=-1, keepdims=True)
    log_p_t = shifted_t - lse                                # (TB, 1)

    if eps == 0.0:
        # Hard one-hot targets: only the target class survives the final mask,
        # so asymmetric_w collapses to (1 - p_t)**gamma_pos per row.
        if gamma_pos == 0.0:
            row_loss = -log_p_t                              # plain cross-entropy
        else:
            p_t = jnp.exp(log_p_t)                           # (TB, 1) EUP op, cheap
            w_pos = jnp.power(jnp.maximum(1.0 - p_t, 0.0), jnp.float32(gamma_pos))
            row_loss = -(w_pos * log_p_t)
    else:
        # Label-smoothing path, split algebraically into one full-tile reduce
        # plus per-row column corrections:
        #   loss = -[ (eps/C)*(sum_j logp_j*p_j^gn - logp_t*p_t^gn)
        #             + (1-eps+eps/C)*logp_t*(1-p_t)^gp ]
        inv_sum = 1.0 / sum_exp                              # (TB, 1)
        p = exp_shifted * inv_sum                            # (TB, C) VPU multiply
        log_preds = shifted - lse                            # (TB, C)
        w_neg = _pow_neg(p, gamma_neg)                       # (TB, C) repeated squaring
        s_all = jnp.sum(log_preds * w_neg, axis=-1, keepdims=True)   # (TB, 1)

        p_t = jnp.exp(log_p_t)                               # (TB, 1)
        w_neg_t = _pow_neg(p_t, gamma_neg)                   # (TB, 1)
        if gamma_pos == 0.0:
            pos_term = log_p_t
        else:
            w_pos_t = jnp.power(jnp.maximum(1.0 - p_t, 0.0), jnp.float32(gamma_pos))
            pos_term = log_p_t * w_pos_t

        eps_c = eps / num_classes
        row_loss = -(eps_c * (s_all - log_p_t * w_neg_t)
                     + (1.0 - eps + eps_c) * pos_term)

    # Garbage over-hang rows may carry Inf/NaN -> select, don't multiply.
    row_loss = jnp.where(valid, row_loss, 0.0)               # (TB, 1)

    if reduce_rows:
        # One partial sum per grid step, written into an aligned (8,128) slab
        # (value at [0,0], zeros elsewhere) -> no lane-sparse column stores.
        partial = jnp.sum(row_loss)
        rr = jax.lax.broadcasted_iota(jnp.int32, (8, 128), 0)
        cc = jax.lax.broadcasted_iota(jnp.int32, (8, 128), 1)
        out_ref[...] = jnp.where((rr == 0) & (cc == 0), partial, 0.0)
    else:
        out_ref[...] = row_loss.astype(out_ref.dtype)


def _choose_row_tile(batch, num_classes, dtype, eps):
    """Pick the row-tile size from a VMEM budget that accounts for the f32
    intermediates and the double-buffered input block."""
    itemsize = jnp.dtype(dtype).itemsize
    sub = max(8, 32 // max(itemsize, 1))       # 8 for f32, 16 for bf16, 32 for 8-bit
    # live full-tile f32 intermediates (upcast, shifted, exp, select temp / p,
    # w_neg, log_preds, product) + 2x double-buffered input block
    n_f32 = 4 if eps == 0.0 else 7
    bytes_per_row = num_classes * (2 * itemsize + n_f32 * 4)
    budget = 36 * 1024 * 1024                  # keeps total well under v7x's 64 MiB
    tb = budget // max(bytes_per_row, 1)
    tb = max(sub, min(int(tb), 32768))         # cap to keep compile/vreg pressure sane
    tb = (tb // sub) * sub
    b_ceil = ((batch + sub - 1) // sub) * sub  # never tile past the (rounded) batch
    return max(sub, min(tb, b_ceil))


def asl_single_label_loss(inputs, target, *, gamma_pos=0.0, gamma_neg=4.0,
                          eps=0.0, reduction="mean"):
    """Pallas implementation of ASLSingleLabel.forward."""
    B, C = inputs.shape
    tb = _choose_row_tile(B, C, inputs.dtype, float(eps))
    n_tiles = (B + tb - 1) // tb
    reduce_rows = reduction in ("mean", "sum")

    tgt2d = target.astype(jnp.int32).reshape(B, 1)

    kernel = functools.partial(
        _asl_kernel,
        gamma_pos=float(gamma_pos),
        gamma_neg=float(gamma_neg),
        eps=float(eps),
        num_classes=C,
        batch_size=B,
        reduce_rows=reduce_rows,
    )

    if reduce_rows:
        out_shape = jax.ShapeDtypeStruct((n_tiles * 8, 128), jnp.float32)
        out_spec = pl.BlockSpec((8, 128), lambda i: (i, 0))
    else:
        # over-allocate (cheap, output only); tail rows are written as exact zeros
        out_shape = jax.ShapeDtypeStruct((n_tiles * tb, 1), jnp.float32)
        out_spec = pl.BlockSpec((tb, 1), lambda i: (i, 0))

    out = pl.pallas_call(
        kernel,
        out_shape=out_shape,
        grid_spec=pltpu.PrefetchScalarGridSpec(
            num_scalar_prefetch=0,
            grid=(n_tiles,),
            in_specs=[
                pl.BlockSpec((tb, C), lambda i: (i, 0)),   # logits: no host-side pad
                pl.BlockSpec((tb, 1), lambda i: (i, 0)),   # targets
            ],
            out_specs=out_spec,
        ),
        compiler_params=pltpu.CompilerParams(
            dimension_semantics=("parallel",),   # megacore-shardable on v7x
            vmem_limit_bytes=48 * 1024 * 1024,
        ),
    )(inputs, tgt2d)

    if reduction == "mean":
        return jnp.sum(out) / B
    elif reduction == "sum":
        return jnp.sum(out)
    else:  # 'none'
        return out[:B, 0]


def _reference(inputs, target, gamma_pos=0.0, gamma_neg=4.0, eps=0.0,
               reduction="mean"):
    # Pure-JAX reference mirroring the PyTorch forward.
    x = inputs.astype(jnp.float32)
    C = x.shape[-1]
    log_preds = jax.nn.log_softmax(x, axis=-1)
    targets = jax.nn.one_hot(target, C, dtype=jnp.float32)
    anti = 1.0 - targets
    xs_pos = jnp.exp(log_preds) * targets
    xs_neg = (1.0 - jnp.exp(log_preds)) * anti
    w = jnp.power(1.0 - xs_pos - xs_neg, gamma_pos * targets + gamma_neg * anti)
    log_preds = log_preds * w
    tc = targets
    if eps > 0.0:
        tc = tc * (1.0 - eps) + eps / C
    loss = jnp.sum(-(tc * log_preds), axis=-1)
    if reduction == "mean":
        return jnp.mean(loss)
    elif reduction == "sum":
        return jnp.sum(loss)
    return loss


if __name__ == "__main__":
    key = jax.random.PRNGKey(0)
    k1, k2 = jax.random.split(key)

    batch, num_classes = 8, 32
    inputs = jax.random.normal(k1, (batch, num_classes), dtype=jnp.float32)
    target = jax.random.randint(k2, (batch,), 0, num_classes, dtype=jnp.int32)

    # Default config (gamma_pos=0, gamma_neg=4, eps=0) -> specialized CE fast path.
    loss = jax.block_until_ready(asl_single_label_loss(inputs, target))
    ref = _reference(inputs, target)
    assert jnp.allclose(loss, ref, rtol=1e-5, atol=1e-5), (loss, ref)

    # Label-smoothing + focal path (eps>0, gamma_pos>0) with a batch that is not a
    # multiple of the row tile (exercises the unpadded over-hanging tail tile).
    k3, k4 = jax.random.split(k2)
    b2 = 13
    x2 = jax.random.normal(k3, (b2, num_classes), dtype=jnp.float32)
    t2 = jax.random.randint(k4, (b2,), 0, num_classes, dtype=jnp.int32)
    loss2 = jax.block_until_ready(
        asl_single_label_loss(x2, t2, gamma_pos=1.0, gamma_neg=4.0, eps=0.1))
    ref2 = _reference(x2, t2, gamma_pos=1.0, gamma_neg=4.0, eps=0.1)
    assert jnp.allclose(loss2, ref2, rtol=1e-5, atol=1e-5), (loss2, ref2)

    # reduction='none' path (per-row column output, over-hanging tail masked).
    loss3 = jax.block_until_ready(
        asl_single_label_loss(x2, t2, gamma_pos=0.0, gamma_neg=4.0, eps=0.0,
                              reduction="none"))
    ref3 = _reference(x2, t2, gamma_pos=0.0, gamma_neg=4.0, eps=0.0,
                      reduction="none")
    assert loss3.shape == (b2,)
    assert jnp.allclose(loss3, ref3, rtol=1e-5, atol=1e-5), (loss3, ref3)

    print("KERNEL_OK")
</pallas_src>

<mosaic_0001>
module attributes {stable_mosaic.version = 11 : i64} {
  func.func @_asl_kernel(%arg0: i32, %arg1: memref<8x32xf32, #tpu.memory_space<vmem>>, %arg2: memref<8x1xi32, #tpu.memory_space<vmem>>, %arg3: memref<8x128xf32, #tpu.memory_space<vmem>>) attributes {dimension_semantics = [#tpu.dimension_semantics<parallel>], iteration_bounds = array<i64: 1>, scalar_prefetch = 0 : i64, scratch_operands = 0 : i64, tpu.core_type = #tpu.core_type<tc>, window_params = [{transform_indices = @transform_0, window_bounds = array<i64: 8, 32>}, {transform_indices = @transform_1, window_bounds = array<i64: 8, 1>}, {transform_indices = @transform_2, window_bounds = array<i64: 8, 128>}]} {
    %c0 = arith.constant 0 : index
    %c0_0 = arith.constant 0 : index
    %0 = vector.load %arg1[%c0, %c0_0] : memref<8x32xf32, #tpu.memory_space<vmem>>, vector<8x32xf32>
    %c0_1 = arith.constant 0 : index
    %c0_2 = arith.constant 0 : index
    %1 = vector.load %arg2[%c0_1, %c0_2] : memref<8x1xi32, #tpu.memory_space<vmem>>, vector<8x1xi32>
    %cst = arith.constant dense<0xFF800000> : vector<8xf32>
    %2 = vector.multi_reduction <maximumf>, %0, %cst [1] : vector<8x32xf32> to vector<8xf32>
    %3 = vector.shape_cast %2 : vector<8xf32> to vector<8x1xf32>
    %4 = vector.broadcast %3 : vector<8x1xf32> to vector<8x32xf32>
    %5 = arith.subf %0, %4 : vector<8x32xf32>
    %6 = math.exp %5 : vector<8x32xf32>
    %cst_3 = arith.constant dense<0.000000e+00> : vector<8xf32>
    %7 = vector.multi_reduction <add>, %6, %cst_3 [1] : vector<8x32xf32> to vector<8xf32>
    %8 = vector.shape_cast %7 : vector<8xf32> to vector<8x1xf32>
    %9 = math.log %8 : vector<8x1xf32>
    %10 = tpu.iota {dimensions = array<i32: 1>} : vector<8x32xi32>
    %11 = vector.broadcast %1 : vector<8x1xi32> to vector<8x32xi32>
    %12 = arith.cmpi eq, %10, %11 : vector<8x32xi32>
    %13 = tpu.iota {dimensions = array<i32: 0>} : vector<8x1xi32>
    %c8_i32 = arith.constant 8 : i32
    %14 = arith.muli %arg0, %c8_i32 : i32
    %15 = vector.broadcast %14 : i32 to vector<8x1xi32>
    %16 = arith.addi %15, %13 : vector<8x1xi32>
    %c8_i32_4 = arith.constant 8 : i32
    %17 = vector.broadcast %c8_i32_4 : i32 to vector<8x1xi32>
    %18 = arith.cmpi slt, %16, %17 : vector<8x1xi32>
    %cst_5 = arith.constant 0.000000e+00 : f32
    %19 = vector.broadcast %cst_5 : f32 to vector<8x32xf32>
    %20 = arith.select %12, %5, %19 : vector<8x32xi1>, vector<8x32xf32>
    %cst_6 = arith.constant dense<0.000000e+00> : vector<8xf32>
    %21 = vector.multi_reduction <add>, %20, %cst_6 [1] : vector<8x32xf32> to vector<8xf32>
    %22 = vector.shape_cast %21 : vector<8xf32> to vector<8x1xf32>
    %23 = arith.subf %22, %9 : vector<8x1xf32>
    %cst_7 = arith.constant 0.000000e+00 : f32
    %24 = vector.broadcast %cst_7 : f32 to vector<8x1xf32>
    %25 = arith.subf %24, %23 : vector<8x1xf32>
    %cst_8 = arith.constant 0.000000e+00 : f32
    %26 = vector.broadcast %cst_8 : f32 to vector<8x1xf32>
    %27 = arith.select %18, %25, %26 : vector<8x1xi1>, vector<8x1xf32>
    %28 = vector.shape_cast %27 : vector<8x1xf32> to vector<1x8x1xf32>
    %cst_9 = arith.constant dense<0.000000e+00> : vector<1xf32>
    %29 = vector.multi_reduction <add>, %28, %cst_9 [1, 2] : vector<1x8x1xf32> to vector<1xf32>
    %30 = vector.shape_cast %29 : vector<1xf32> to vector<1x1x1xf32>
    %31 = vector.extract %30[0, 0, 0] : f32 from vector<1x1x1xf32>
    %32 = tpu.iota {dimensions = array<i32: 0>} : vector<8x128xi32>
    %33 = tpu.iota {dimensions = array<i32: 1>} : vector<8x128xi32>
    %c0_i32 = arith.constant 0 : i32
    %34 = vector.broadcast %c0_i32 : i32 to vector<8x128xi32>
    %35 = arith.cmpi eq, %32, %34 : vector<8x128xi32>
    %c0_i32_10 = arith.constant 0 : i32
    %36 = vector.broadcast %c0_i32_10 : i32 to vector<8x128xi32>
    %37 = arith.cmpi eq, %33, %36 : vector<8x128xi32>
    %38 = arith.andi %35, %37 : vector<8x128xi1>
    %cst_11 = arith.constant 0.000000e+00 : f32
    %39 = vector.broadcast %31 : f32 to vector<8x128xf32>
    %40 = vector.broadcast %cst_11 : f32 to vector<8x128xf32>
    %41 = arith.select %38, %39, %40 : vector<8x128xi1>, vector<8x128xf32>
    %c0_12 = arith.constant 0 : index
    %c0_13 = arith.constant 0 : index
    %42 = vector.load %arg3[%c0_12, %c0_13] : memref<8x128xf32, #tpu.memory_space<vmem>>, vector<8x128xf32>
    tpu.vector_store %arg3[%c0_12, %c0_13], %41 {strides = array<i32>} : memref<8x128xf32, #tpu.memory_space<vmem>>, vector<8x128xf32>,
    return
  }
  func.func @transform_0(%arg0: i32) -> (i32, i32) {
    %c0_i32 = arith.constant 0 : i32
    %c0_i32_0 = arith.constant 0 : i32
    return %arg0, %c0_i32 : i32, i32
  }
  func.func @transform_1(%arg0: i32) -> (i32, i32) {
    %c0_i32 = arith.constant 0 : i32
    %c0_i32_0 = arith.constant 0 : i32
    return %arg0, %c0_i32 : i32, i32
  }
  func.func @transform_2(%arg0: i32) -> (i32, i32) {
    %c0_i32 = arith.constant 0 : i32
    %c0_i32_0 = arith.constant 0 : i32
    return %arg0, %c0_i32 : i32, i32
  }
}

</mosaic_0001>

<bundles_post_ra>
// kernel: tpu_custom_call.1
= control target key start
LH: loop header
LB: loop body
LE: loop exit
PB: predicated region body
PF: predicated region fallthrough
CT: control target
= control target key end

     0   :  { %vm14_vm0 = vcmask 261120   ;;  %s136_s0 = inlined_call_operand.vmem [shape: f32[8,32], index: 0, kind: input, shape index: {}]   ;;  %s137_s1 = inlined_call_operand.vmem [shape: s32[8,1], index: 1, kind: input, shape index: {}]   ;;  %s138_s2 = inlined_call_operand.hbm [shape: f32[8,128], index: 2, kind: output, shape index: {}]  }
   0x1   :  { %v12_v0 = vld [vmem:[%s136_s0] sm:$0xff] }
   0x2   :  { %7 = vsyncpa [#allocation3], 0  ;;  %v15_v1 = vsel %vm14_vm0, %v12_v0, -inf  ;;  %v107_v2 = vmov 0   ;;  %v13_v3 = vld [vmem:[%s137_s1] sm:$0xff]  ;;  %v26_v7 = vlaneseq  ;;  %vm45_vm2 = vcmask 7168  }
   0x3   :  { %80 = vset.pattern.permute.xlu0 %v107_v2  ;;  %s108_s0 = smov [#allocation2]  }
   0x4   :  { %16 = vmax.xlane.f32.xlu0 %v15_v1  ;;  %v27_v8 = vand.u32 127, %v26_v7  ;;  %v33_v28 = vshrl.u32 %v26_v7, 7  ;;  %s68_s1 = sshll.u32 %s108_s0, 4  ;;  %s69_s1 = int_to_ptr.vmem [resolvable:$true] %s68_s1 }
   0x5   :  { %s85_s14 = scalar_lea.vmem %s69_s1, 128  ;;  %p90_p1 = scmp.lt.s32.totalorder %s69_s1, %s69_s1 }
   0x6   :  { %vm56_vm3 = vcmp.eq.s32.totalorder %v33_v28, 0  ;;  %vm57_vm4 = vcmp.eq.s32.totalorder %v27_v8, 0  ;;  %p86_p0 = scmp.ne.s32.totalorder %s69_s1, %s85_s14  ;;  %p91_p2 = scmp.lt.s32.totalorder %s85_s14, %s85_s14 }
   0x7   :  { %vm58_vm5 = vmand %vm56_vm3, %vm57_vm4 }
   0x8   :  { %p92_p3 = por %p91_p2, %p90_p1 }
   0xa   :  { %p93_p4 = pnand %p92_p3, %p86_p0 }
  0x1a   :  { %29 = vperm.xlu0 %80, %v13_v3  }
  0x8d   :  { %v17_v4 = vpop.xlane.xlu0 %16 }
  0x8e   :  { %v18_v5 = vsub.f32 %v12_v0, %v17_v4 }
  0x90   :  { %v19_v6 = vmul.f32 1.442695, %v18_v5 }
  0x92   :  { %81 = vpow2.f32 %v19_v6 }
  0x95   :  { %v30_v9 = vpop.permute.xlu0 %29 }
  0x96   :  { %vm31_vm1 = vcmp.eq.s32.totalorder %v27_v8, %v30_v9 }
  0x97   :  { %v38_v12 = vsel %vm31_vm1, %v18_v5, 0.0 }
  0x98   :  { %v39_v13 = vsel %vm14_vm0, %v38_v12, 0.0 }
  0x9f   :  { %v82_v10 = vpop.eup %81 }
  0xa0   :  { %v21_v11 = vsel %vm14_vm0, %v82_v10, 0.0 }
  0xa1   :  { %22 = vadd.xlane.f32.xlu1 %v21_v11 }
  0xa5   :  { %40 = vadd.xlane.f32.xlu1 %v39_v13 }
 0x12a   :  { %v23_v14 = vpop.xlane.xlu1 %22 }
 0x12b   :  { %83 = vlog2.f32 %v23_v14 }
 0x12e   :  { %v41_v17 = vpop.xlane.xlu1 %40 }
 0x138   :  { %v84_v15 = vpop.eup %83 }
 0x139   :  { %v25_v16 = vmul.f32 0.6931472, %v84_v15 }
 0x13b   :  { %v42_v18 = vsub.f32 %v41_v17, %v25_v16 }
 0x13d   :  { %v43_v19 = vsub.f32 0.0, %v42_v18 }
 0x13f   :  { %v46_v20 = vsel %vm45_vm2, %v43_v19, 0.0 }
 0x140   :  { %47 = vadd.xlane.f32.xlu1 %v46_v20 }
 0x1c9   :  { %v48_v21 = vpop.xlane.xlu1 %47 }
 0x1ca   :  { %v49_v22 = vrot.slane %v48_v21, 4 }
 0x1cc   :  { %v50_v23 = vadd.f32 %v49_v22, %v48_v21 }
 0x1ce   :  { %v51_v24 = vrot.slane %v50_v23, 2 }
 0x1d0   :  { %v52_v25 = vadd.f32 %v51_v24, %v50_v23 }
 0x1d2   :  { %v53_v26 = vrot.slane %v52_v25, 1 }
 0x1d4   :  { %v54_v27 = vadd.f32 %v53_v26, %v52_v25 }
 0x1d6   :  { %76 = vpush %v54_v27 }
 0x207   :  { %s77_s13 = spop %76 }
 0x208   :  { %v59_v29 = vstv %s77_s13 }
 0x209   :  { %v60_v30 = vsel %vm58_vm5, %v59_v29, 0.0 }
 0x20a   :  { %61 = vst [vmem:[#allocation2] sm:$0xff] %v60_v30 }
 0x20b   :  { %96 = shalt.err (!%p93_p4)
}
 0x20c   :  { %71 = dma.vmem_to_hbm [thread:$0]  %s69_s1, 128, %s138_s2, [#allocation3]  }
 0x20d   :  { %105 = dma.done.wait [#allocation3], 128  }
 0x20e   :  { %106 = vsyncadd [#allocation3], 4294967168 }
 0x20f   :  { %75 = vsyncpa [#allocation3], 1 }

</bundles_post_ra>
